<compile_context>
chip_gen: v7x
topology: tpu7x:2x2x1
jax: 0.10.0
libtpu: 0.0.40
codegen_flags: <defaults>
</compile_context>

<pallas_src>
import functools

import jax
import jax.numpy as jnp
from jax.experimental import pallas as pl
from jax.experimental.pallas import tpu as pltpu


def _round_up(x, m):
    return (x + m - 1) // m * m


# ----------------------- Stage 1: projection kernel -----------------------

def _project_kernel(h_ref, w_ref, a_ref, wh_ref, score_ref):
    # Wh = h @ W : bf16 operands on the MXU, f32 accumulate.
    wh = jnp.dot(h_ref[...], w_ref[...], preferred_element_type=jnp.float32)
    wh_bf = wh.astype(jnp.bfloat16)
    wh_ref[...] = wh_bf
    # Both score projections with a single MXU matvec against a lane-padded
    # [F_out_p, 128] matrix (col 0 = a1 / query side, col 1 = a2 / key side).
    # Stored lane-dense ([tq1, 128] f32) so the store is an unmasked vst.
    score_ref[...] = jnp.dot(wh_bf, a_ref[...], preferred_element_type=jnp.float32)


# ----------------------- Stage 2: attention kernel ------------------------

def _attention_kernel(flag_ref, score_ref, wh2_ref, adj_ref, wh_ref, out_ref,
                      m_sc, l_sc, acc_sc, *, alpha, tk, wh_resident):
    i = pl.program_id(0)
    j = pl.program_id(1)

    @pl.when(j == 0)
    def _init():
        m_sc[...] = jnp.full_like(m_sc, -jnp.inf)
        l_sc[...] = jnp.zeros_like(l_sc)
        acc_sc[...] = jnp.zeros_like(acc_sc)

    # Block-sparse skip: only process tiles with at least one edge (row tiles that
    # contain an isolated node are forced dense in the wrapper, so the degenerate
    # all-masked softmax of the reference is preserved and l never ends up 0).
    @pl.when(flag_ref[i, j] > 0)
    def _compute():
        if wh_resident:
            off = pl.multiple_of(j * tk, tk)
            whk = wh_ref[pl.ds(off, tk), :]            # [tk, F_out_p] bf16, VMEM-resident slab
        else:
            whk = wh_ref[...]                          # [tk, F_out_p] bf16, streamed per step

        wh1 = score_ref[...][:, 0:1]                   # [tq, 1] query-side scores (f32)
        wh2t = wh2_ref[...]                            # [1, tk] key-side scores (f32)

        # e = leakyrelu(Wh1 + Wh2^T), scores kept in f32 (only MXU operands are bf16).
        e = wh1 + wh2t                                 # [tq, tk]
        e = jnp.maximum(e, alpha * e)                  # LeakyReLU (assumes 0 < alpha <= 1)
        # Adjacency mask (int8 adjacency, same -9e15 sentinel as the PyTorch layer).
        s = jnp.where(adj_ref[...] > 0, e, -9.0e15)

        # Online softmax update (m / l / acc in f32 scratch).
        m_prev = m_sc[...]
        m_new = jnp.maximum(m_prev, jnp.max(s, axis=1, keepdims=True))
        corr = jnp.exp(m_prev - m_new)                 # m_new is finite -> corr well-defined
        p = jnp.exp(s - m_new)                         # [tq, tk] f32
        l_sc[...] = corr * l_sc[...] + jnp.sum(p, axis=1, keepdims=True)
        acc_sc[...] = corr * acc_sc[...] + jnp.dot(
            p.astype(jnp.bfloat16), whk, preferred_element_type=jnp.float32)
        m_sc[...] = m_new

    @pl.when(j == pl.num_programs(1) - 1)
    def _finalize():
        l = l_sc[...]
        l = jnp.where(l > 0.0, l, 1.0)                 # safety guard (never hit with self-loops)
        h_prime = acc_sc[...] * pl.reciprocal(l, approx=True)
        # concat=True -> ELU
        out_ref[...] = jnp.where(h_prime > 0, h_prime,
                                 jnp.expm1(h_prime)).astype(out_ref.dtype)


# ------------------------------ wrapper ------------------------------------

def gat_layer(h, W, a, adj, *, alpha, tq=None, tk_max=1024):
    """Pallas GAT forward. h:[N,Fin], W:[Fin,Fout], a:[2*Fout,1], adj:[N,N] -> [N,Fout] f32."""
    n, f_in = h.shape
    f_out = W.shape[1]
    f32, bf16 = jnp.float32, jnp.bfloat16

    # Lane-pad feature dims to multiples of 128; pad N to the query tile.
    f_in_p = _round_up(f_in, 128)
    f_out_p = _round_up(f_out, 128)

    if tq is None:
        # tq=256 fills the 256-wide MXU on v6e/v7x; keep 128 for small graphs so the
        # "parallel" axis has >= 2 steps whenever possible (v7x 2-TC sharding).
        tq = 256 if n > 256 else 128
    n_pad = _round_up(n, tq)

    tk = 128
    for cand in (1024, 512, 256, 128):
        if cand <= tk_max and cand <= n_pad and n_pad % cand == 0:
            tk = cand
            break

    tq1 = 128                                          # Stage-1 row tile (independent of tq)
    for cand in (1024, 512, 256, 128):
        if cand <= n_pad and n_pad % cand == 0:
            tq1 = cand
            break

    gi, gj = n_pad // tq, n_pad // tk

    # Zero-padded inputs (padding is mathematically inert: padded rows/cols of W/a are
    # zero, padded adjacency is zero -> masked out; padded query rows are sliced away).
    h_p = jnp.zeros((n_pad, f_in_p), bf16).at[:n, :f_in].set(h.astype(bf16))
    w_p = jnp.zeros((f_in_p, f_out_p), bf16).at[:f_in, :f_out].set(W.astype(bf16))
    a_mat = (jnp.zeros((f_out_p, 128), bf16)
             .at[:f_out, 0].set(a[:f_out, 0].astype(bf16))
             .at[:f_out, 1].set(a[f_out:, 0].astype(bf16)))
    adj_i8 = jnp.zeros((n_pad, n_pad), jnp.int8).at[:n, :n].set((adj > 0).astype(jnp.int8))

    # Per-(i,j)-tile edge counts for block-sparse skipping; row tiles containing an
    # isolated (zero-degree) real node are forced dense to keep the reference's
    # degenerate all-masked softmax semantics (self-loops make this moot in practice).
    adj_i32 = adj_i8.astype(jnp.int32)
    tile_cnt = adj_i32.reshape(gi, tq, gj, tk).sum(axis=(1, 3))
    deg = adj_i32.sum(axis=1)
    deg = deg.at[n:].set(1)                            # padded rows never count as isolated
    isolated = (deg.reshape(gi, tq) == 0).any(axis=1)
    flags = ((tile_cnt > 0) | isolated[:, None]).astype(jnp.int32)

    vmem_limit = 32 * 1024 * 1024                      # safe on v5e/v6e and under v7x's 64 MiB

    # ---- Stage 1: Wh (bf16) + lane-dense score block (f32), once per row tile ----
    wh_bf, scores = pl.pallas_call(
        _project_kernel,
        out_shape=(jax.ShapeDtypeStruct((n_pad, f_out_p), bf16),
                   jax.ShapeDtypeStruct((n_pad, 128), f32)),
        grid_spec=pltpu.PrefetchScalarGridSpec(
            num_scalar_prefetch=0,
            grid=(n_pad // tq1,),
            in_specs=[pl.BlockSpec((tq1, f_in_p), lambda i: (i, 0)),
                      pl.BlockSpec((f_in_p, f_out_p), lambda i: (0, 0)),
                      pl.BlockSpec((f_out_p, 128), lambda i: (0, 0))],
            out_specs=[pl.BlockSpec((tq1, f_out_p), lambda i: (i, 0)),
                       pl.BlockSpec((tq1, 128), lambda i: (i, 0))]),
        compiler_params=pltpu.CompilerParams(
            dimension_semantics=("parallel",), vmem_limit_bytes=vmem_limit),
    )(h_p, w_p, a_mat)

    # Key-side scores as a lane-dense [1, n_pad] f32 row (tiny wrapper-side relayout).
    wh2_row = scores[:, 1].reshape(1, n_pad)

    # Keep Wh resident in VMEM when the (double-buffered) slab fits comfortably;
    # otherwise fall back to streaming (tk, F_out_p) key tiles from HBM per step.
    wh_resident = (n_pad * f_out_p * 2 * 2) <= (12 * 1024 * 1024)
    if wh_resident:
        wh_spec = pl.BlockSpec((n_pad, f_out_p), lambda i, j, f: (0, 0))
    else:
        wh_spec = pl.BlockSpec((tk, f_out_p), lambda i, j, f: (j, 0))

    # ---- Stage 2: masked attention + online softmax + aggregation + ELU ----
    kernel = functools.partial(_attention_kernel, alpha=alpha, tk=tk,
                               wh_resident=wh_resident)
    out = pl.pallas_call(
        kernel,
        out_shape=jax.ShapeDtypeStruct((n_pad, f_out_p), f32),
        grid_spec=pltpu.PrefetchScalarGridSpec(
            num_scalar_prefetch=1,
            grid=(gi, gj),
            in_specs=[pl.BlockSpec((tq, 128), lambda i, j, f: (i, 0)),   # query-side scores
                      pl.BlockSpec((1, tk), lambda i, j, f: (0, j)),     # key-side score row
                      pl.BlockSpec((tq, tk), lambda i, j, f: (i, j)),    # adjacency (int8)
                      wh_spec],                                          # Wh (key side)
            out_specs=pl.BlockSpec((tq, f_out_p), lambda i, j, f: (i, 0)),
            scratch_shapes=[pltpu.VMEM((tq, 1), f32),        # running max m
                            pltpu.VMEM((tq, 1), f32),        # running sum l
                            pltpu.VMEM((tq, f_out_p), f32)]),  # accumulator
        compiler_params=pltpu.CompilerParams(
            dimension_semantics=("parallel", "arbitrary"),
            vmem_limit_bytes=vmem_limit),
    )(flags, scores, wh2_row, adj_i8, wh_bf)

    return out[:n, :f_out]


def _xavier_uniform(key, shape, gain=1.414):
    fan_in, fan_out = shape[0], shape[1]
    bound = gain * jnp.sqrt(6.0 / (fan_in + fan_out))
    return jax.random.uniform(key, shape, jnp.float32, -bound, bound)


if __name__ == "__main__":
    # Small, deterministic problem: N=8 nodes, in_features=16, out_features=32.
    N, F_IN, F_OUT = 8, 16, 32
    ALPHA = 0.2  # LeakyReLU negative slope

    key = jax.random.PRNGKey(0)
    k_h, k_adj, k_w, k_a = jax.random.split(key, 4)

    h = jax.random.normal(k_h, (N, F_IN), jnp.float32)
    # Random adjacency with self-loops (values in {0,1}).
    adj = (jax.random.uniform(k_adj, (N, N)) > 0.5).astype(jnp.float32)
    adj = jnp.maximum(adj, jnp.eye(N, dtype=jnp.float32))

    W = _xavier_uniform(k_w, (F_IN, F_OUT))
    a = _xavier_uniform(k_a, (2 * F_OUT, 1))

    out = gat_layer(h, W, a, adj, alpha=ALPHA)
    jax.block_until_ready(out)

    # Reference 1: exact f32 math of the PyTorch layer (loose tolerance — the kernel
    # deliberately uses bf16 MXU operands).
    wh = h @ W
    e = wh @ a[:F_OUT] + (wh @ a[F_OUT:]).T
    e = jnp.where(e > 0, e, ALPHA * e)
    att = jnp.where(adj > 0, e, -9.0e15)
    att = jax.nn.softmax(att, axis=1)
    ref32 = jax.nn.elu(att @ wh)

    # Reference 2: same math with matmul operands cast to bf16 (matches the kernel's
    # operand precision) — tight tolerance.
    bf = jnp.bfloat16
    whb = jnp.dot(h.astype(bf), W.astype(bf), preferred_element_type=jnp.float32)
    whb16 = whb.astype(bf)
    wh1b = jnp.dot(whb16, a[:F_OUT].astype(bf), preferred_element_type=jnp.float32)
    wh2b = jnp.dot(whb16, a[F_OUT:].astype(bf), preferred_element_type=jnp.float32)
    eb = wh1b + wh2b.T
    eb = jnp.where(eb > 0, eb, ALPHA * eb)
    attb = jnp.where(adj > 0, eb, -9.0e15)
    attb = jax.nn.softmax(attb, axis=1)
    refbf = jax.nn.elu(jnp.dot(attb.astype(bf), whb16,
                               preferred_element_type=jnp.float32))

    assert jnp.allclose(out, refbf, atol=2e-2, rtol=2e-2), "mismatch vs bf16-matched reference"
    assert jnp.allclose(out, ref32, atol=1e-1, rtol=1e-1), "mismatch vs f32 reference"

    print("KERNEL_OK")
</pallas_src>

<mosaic_0001>
module attributes {stable_mosaic.version = 11 : i64} {
  func.func @_project_kernel(%arg0: i32, %arg1: memref<128x128xbf16, #tpu.memory_space<vmem>>, %arg2: memref<128x128xbf16, #tpu.memory_space<vmem>>, %arg3: memref<128x128xbf16, #tpu.memory_space<vmem>>, %arg4: memref<128x128xbf16, #tpu.memory_space<vmem>>, %arg5: memref<128x128xf32, #tpu.memory_space<vmem>>) attributes {dimension_semantics = [#tpu.dimension_semantics<parallel>], iteration_bounds = array<i64: 1>, scalar_prefetch = 0 : i64, scratch_operands = 0 : i64, tpu.core_type = #tpu.core_type<tc>, window_params = [{transform_indices = @transform_0, window_bounds = array<i64: 128, 128>}, {pipeline_mode = #tpu.pipeline_mode<synchronous>, transform_indices = @transform_1, window_bounds = array<i64: 128, 128>}, {pipeline_mode = #tpu.pipeline_mode<synchronous>, transform_indices = @transform_2, window_bounds = array<i64: 128, 128>}, {transform_indices = @transform_3, window_bounds = array<i64: 128, 128>}, {transform_indices = @transform_4, window_bounds = array<i64: 128, 128>}]} {
    %c0 = arith.constant 0 : index
    %c0_0 = arith.constant 0 : index
    %0 = vector.load %arg1[%c0, %c0_0] : memref<128x128xbf16, #tpu.memory_space<vmem>>, vector<128x128xbf16>
    %c0_1 = arith.constant 0 : index
    %c0_2 = arith.constant 0 : index
    %1 = vector.load %arg2[%c0_1, %c0_2] : memref<128x128xbf16, #tpu.memory_space<vmem>>, vector<128x128xbf16>
    %cst = arith.constant dense<0.000000e+00> : vector<128x128xf32>
    %2 = tpu.matmul %0, %1, %cst {dimension_numbers = #tpu.dot_dimension_numbers<[1], [0], [0], [1], [0, 0, 1, 1], [], []>} : vector<128x128xbf16>, vector<128x128xbf16>, vector<128x128xf32> -> vector<128x128xf32>
    %3 = arith.truncf %2 : vector<128x128xf32> to vector<128x128xbf16>
    %c0_3 = arith.constant 0 : index
    %c0_4 = arith.constant 0 : index
    %4 = vector.load %arg4[%c0_3, %c0_4] : memref<128x128xbf16, #tpu.memory_space<vmem>>, vector<128x128xbf16>
    tpu.vector_store %arg4[%c0_3, %c0_4], %3 {strides = array<i32>} : memref<128x128xbf16, #tpu.memory_space<vmem>>, vector<128x128xbf16>,
    %c0_5 = arith.constant 0 : index
    %c0_6 = arith.constant 0 : index
    %5 = vector.load %arg3[%c0_5, %c0_6] : memref<128x128xbf16, #tpu.memory_space<vmem>>, vector<128x128xbf16>
    %cst_7 = arith.constant dense<0.000000e+00> : vector<128x128xf32>
    %6 = tpu.matmul %3, %5, %cst_7 {dimension_numbers = #tpu.dot_dimension_numbers<[1], [0], [0], [1], [0, 0, 1, 1], [], []>} : vector<128x128xbf16>, vector<128x128xbf16>, vector<128x128xf32> -> vector<128x128xf32>
    %c0_8 = arith.constant 0 : index
    %c0_9 = arith.constant 0 : index
    %7 = vector.load %arg5[%c0_8, %c0_9] : memref<128x128xf32, #tpu.memory_space<vmem>>, vector<128x128xf32>
    tpu.vector_store %arg5[%c0_8, %c0_9], %6 {strides = array<i32>} : memref<128x128xf32, #tpu.memory_space<vmem>>, vector<128x128xf32>,
    return
  }
  func.func @transform_0(%arg0: i32) -> (i32, i32) {
    %c0_i32 = arith.constant 0 : i32
    %c0_i32_0 = arith.constant 0 : i32
    return %arg0, %c0_i32 : i32, i32
  }
  func.func @transform_1(%arg0: i32) -> (i32, i32) {
    %c0_i32 = arith.constant 0 : i32
    %c0_i32_0 = arith.constant 0 : i32
    %c0_i32_1 = arith.constant 0 : i32
    return %c0_i32, %c0_i32_0 : i32, i32
  }
  func.func @transform_2(%arg0: i32) -> (i32, i32) {
    %c0_i32 = arith.constant 0 : i32
    %c0_i32_0 = arith.constant 0 : i32
    %c0_i32_1 = arith.constant 0 : i32
    return %c0_i32, %c0_i32_0 : i32, i32
  }
  func.func @transform_3(%arg0: i32) -> (i32, i32) {
    %c0_i32 = arith.constant 0 : i32
    %c0_i32_0 = arith.constant 0 : i32
    return %arg0, %c0_i32 : i32, i32
  }
  func.func @transform_4(%arg0: i32) -> (i32, i32) {
    %c0_i32 = arith.constant 0 : i32
    %c0_i32_0 = arith.constant 0 : i32
    return %arg0, %c0_i32 : i32, i32
  }
}

</mosaic_0001>

<bundles_post_ra>
// kernel: tpu_custom_call.1
= control target key start
LH: loop header
LB: loop body
LE: loop exit
PB: predicated region body
PF: predicated region fallthrough
CT: control target
= control target key end

     0   :  { %10 = vsyncpa [#allocation3], 0  ;;  %s1039_s0 = inlined_call_operand.hbm [shape: bf16[128,128], index: 0, kind: input, shape index: {}]   ;;  %s1040_s1 = inlined_call_operand.hbm [shape: bf16[128,128], index: 1, kind: input, shape index: {}]   ;;  %s1041_s2 = inlined_call_operand.hbm [shape: bf16[128,128], index: 2, kind: input, shape index: {}]   ;;  %s1042_s3 = inlined_call_operand.hbm [shape: bf16[128,128], index: 3, kind: output, shape index: {0}]   ;;  %s1043_s4 = inlined_call_operand.hbm [shape: f32[128,128], index: 4, kind: output, shape index: {1}]  }
   0x1   :  { %11 = vsyncpa [#allocation6], 0 }
   0x2   :  { %12 = vsyncpa [#allocation4], 0 }
   0x3   :  { %13 = vsyncpa [#allocation10], 0  ;;  %s926_s15 = smov [#allocation5]   ;;  %s927_s17 = smov [#allocation2]  }
   0x4   :  { %s31_s16 = sshll.u32 %s926_s15, 4  ;;  %s19_s18 = sshll.u32 %s927_s17, 4  ;;  %s32_s16 = int_to_ptr.vmem [resolvable:$true] %s31_s16  ;;  %s960_s18 = int_to_ptr.vmem [resolvable:$true] %s19_s18 }
   0x5   :  { %s808_s21 = scalar_lea.hbm %s1040_s1, 1024 }
   0x6   :  { %p809_p0 = scmp.ne.s32.totalorder %s1040_s1, %s808_s21  ;;  %p812_p1 = scmp.lt.u32.totalorder %s808_s21, %s1040_s1 }
   0x8   :  { %p814_p2 = pnand %p812_p1, %p809_p0 }
   0xa   :  { %817 = shalt.err (!%p814_p2)
}
   0xb   :  { %s818_s26 = scalar_lea.vmem %s32_s16, 1024  ;;  %p823_p4 = scmp.lt.s32.totalorder %s32_s16, %s32_s16 }
   0xc   :  { %p819_p3 = scmp.ne.s32.totalorder %s32_s16, %s818_s26  ;;  %p824_p5 = scmp.lt.s32.totalorder %s818_s26, %s818_s26 }
   0xe   :  { %p825_p6 = por %p824_p5, %p823_p4 }
  0x10   :  { %p826_p7 = pnand %p825_p6, %p819_p3 }
  0x12   :  { %829 = shalt.err (!%p826_p7)
}
  0x13   :  { %s928_s27 = smov 64   ;;  %s929_s28 = smov 4  }
  0x14   :  { %37 = dma.hbm_to_vmem [thread:$0]  %s1040_s1, 1024, %s32_s16, [#allocation6], %s928_s27, %s928_s27, %s929_s28  }
  0x15   :  { %s830_s7 = scalar_lea.hbm %s1039_s0, 1024 }
  0x16   :  { %p831_p8 = scmp.ne.s32.totalorder %s1039_s0, %s830_s7  ;;  %p834_p9 = scmp.lt.u32.totalorder %s830_s7, %s1039_s0 }
  0x18   :  { %p836_p10 = pnand %p834_p9, %p831_p8 }
  0x1a   :  { %839 = shalt.err (!%p836_p10)
}
  0x1b   :  { %s840_s12 = scalar_lea.vmem %s960_s18, 1024  ;;  %p845_p12 = scmp.lt.s32.totalorder %s960_s18, %s960_s18 }
  0x1c   :  { %p841_p11 = scmp.ne.s32.totalorder %s960_s18, %s840_s12  ;;  %p846_p13 = scmp.lt.s32.totalorder %s840_s12, %s840_s12 }
  0x1e   :  { %p847_p0 = por %p846_p13, %p845_p12 }
  0x20   :  { %p848_p1 = pnand %p847_p0, %p841_p11 }
  0x22   :  { %851 = shalt.err (!%p848_p1)
}
  0x23   :  { %25 = dma.hbm_to_vmem [thread:$0]  %s1039_s0, 1024, %s960_s18, [#allocation3], %s928_s27, %s928_s27, %s929_s28  }
  0x24   :  { %s930_s14 = smov [#allocation7]   ;;  %s852_s19 = scalar_lea.hbm %s1041_s2, 1024 }
  0x25   :  { %s43_s15 = sshll.u32 %s930_s14, 4  ;;  %p853_p2 = scmp.ne.s32.totalorder %s1041_s2, %s852_s19  ;;  %s44_s15 = int_to_ptr.vmem [resolvable:$true] %s43_s15 }
  0x26   :  { %p856_p3 = scmp.lt.u32.totalorder %s852_s19, %s1041_s2 }
  0x28   :  { %p858_p4 = pnand %p856_p3, %p853_p2 }
  0x2a   :  { %861 = shalt.err (!%p858_p4)
}
  0x2b   :  { %s862_s24 = scalar_lea.vmem %s44_s15, 1024  ;;  %p867_p6 = scmp.lt.s32.totalorder %s44_s15, %s44_s15 }
  0x2c   :  { %p863_p5 = scmp.ne.s32.totalorder %s44_s15, %s862_s24  ;;  %p868_p7 = scmp.lt.s32.totalorder %s862_s24, %s862_s24 }
  0x2e   :  { %p869_p8 = por %p868_p7, %p867_p6 }
  0x30   :  { %p870_p9 = pnand %p869_p8, %p863_p5 }
  0x32   :  { %873 = shalt.err (!%p870_p9)
}
  0x33   :  { %49 = dma.hbm_to_vmem [thread:$0]  %s1041_s2, 1024, %s44_s15, [#allocation6], %s928_s27, %s928_s27, %s929_s28  }
  0x34   :  { %918 = dma.done.wait [#allocation3], 1024  }
  0x35   :  { %919 = vsyncadd [#allocation3], 4294966272 }
  0x36   :  { %920 = dma.done.wait [#allocation6], 2048  }
  0x37   :  { %921 = vsyncadd [#allocation6], 4294965248  ;;  %v784_v0 = vld [vmem:[#allocation5] sm:$0xff]   ;;  %v785_v1 = vld [vmem:[#allocation5 + $0x8] sm:$0xff]   ;;  %s931_s2 = smov [#allocation8]  }
  0x38   :  { %711 = vmatprep.subr.bf16.mxu0 %v784_v0  ;;  %v786_v2 = vld [vmem:[#allocation5 + $0x10] sm:$0xff]   ;;  %v787_v3 = vld [vmem:[#allocation5 + $0x18] sm:$0xff]   ;;  %v792_v4 = vld [vmem:[#allocation2] sm:$0xff]   ;;  %s547_s25 = sshll.u32 %s931_s2, 4  ;;  %s548_s25 = int_to_ptr.vmem [resolvable:$true] %s547_s25 }
  0x39   :  { %712 = vmatpush3.bf16.msra.mxu0 %v784_v0  ;;  %727 = vmatprep.mubr.bf16.mxu0 %v792_v4  ;;  %v788_v5 = vld [vmem:[#allocation5 + $0x20] sm:$0xff]   ;;  %v789_v6 = vld [vmem:[#allocation5 + $0x28] sm:$0xff]   ;;  %v790_v9 = vld [vmem:[#allocation5 + $0x30] sm:$0xff]   ;;  %s874_s26 = scalar_lea.vmem %s548_s25, 1024  ;;  %p879_p11 = scmp.lt.s32.totalorder %s548_s25, %s548_s25 }
  0x3a   :  { %713 = vmatprep.subr.bf16.mxu0 %v785_v1  ;;  %v800_v7 = vld [vmem:[#allocation7] sm:$0xff]   ;;  %v801_v8 = vld [vmem:[#allocation7 + $0x8] sm:$0xff]   ;;  %v802_v10 = vld [vmem:[#allocation7 + $0x10] sm:$0xff]   ;;  %p875_p10 = scmp.ne.s32.totalorder %s548_s25, %s874_s26  ;;  %p880_p12 = scmp.lt.s32.totalorder %s874_s26, %s874_s26 }
  0x3b   :  { %743 = vmatprep.subr.bf16.mxu1 %v800_v7  ;;  %v791_v11 = vld [vmem:[#allocation5 + $0x38] sm:$0xff]   ;;  %v804_v13 = vld [vmem:[#allocation7 + $0x20] sm:$0xff]   ;;  %v793_v14 = vld [vmem:[#allocation2 + $0x8] sm:$0xff]  }
  0x3c   :  { %744 = vmatpush3.bf16.msra.mxu1 %v800_v7  ;;  %v803_v12 = vld [vmem:[#allocation7 + $0x18] sm:$0xff]   ;;  %v794_v15 = vld [vmem:[#allocation2 + $0x10] sm:$0xff]   ;;  %v805_v16 = vld [vmem:[#allocation7 + $0x28] sm:$0xff]   ;;  %p881_p13 = por %p880_p12, %p879_p11 }
  0x3d   :  { %714 = vmatpush3.bf16.msra.mxu0 %v785_v1  ;;  %745 = vmatprep.subr.bf16.mxu1 %v801_v8  ;;  %v806_v17 = vld [vmem:[#allocation7 + $0x30] sm:$0xff]   ;;  %v795_v18 = vld [vmem:[#allocation2 + $0x18] sm:$0xff]   ;;  %v796_v19 = vld [vmem:[#allocation2 + $0x20] sm:$0xff]  }
  0x3e   :  { %715 = vmatprep.subr.bf16.mxu0 %v786_v2  ;;  %v797_v20 = vld [vmem:[#allocation2 + $0x28] sm:$0xff]   ;;  %v798_v21 = vld [vmem:[#allocation2 + $0x30] sm:$0xff]   ;;  %v799_v22 = vld [vmem:[#allocation2 + $0x38] sm:$0xff]   ;;  %p882_p0 = pnand %p881_p13, %p875_p10 }
  0x3f   :  { %v807_v23 = vld [vmem:[#allocation7 + $0x38] sm:$0xff]  }
  0x40   :  { %746 = vmatpush3.bf16.msra.mxu1 %v801_v8 }
  0x41   :  { %716 = vmatpush3.bf16.msra.mxu0 %v786_v2  ;;  %747 = vmatprep.subr.bf16.mxu1 %v802_v10 }
  0x42   :  { %717 = vmatprep.subr.bf16.mxu0 %v787_v3 }
  0x44   :  { %748 = vmatpush3.bf16.msra.mxu1 %v802_v10 }
  0x45   :  { %718 = vmatpush3.bf16.msra.mxu0 %v787_v3  ;;  %749 = vmatprep.subr.bf16.mxu1 %v803_v12 }
  0x46   :  { %719 = vmatprep.subr.bf16.mxu0 %v788_v5 }
  0x48   :  { %750 = vmatpush3.bf16.msra.mxu1 %v803_v12 }
  0x49   :  { %720 = vmatpush3.bf16.msra.mxu0 %v788_v5  ;;  %751 = vmatprep.subr.bf16.mxu1 %v804_v13 }
  0x4a   :  { %721 = vmatprep.subr.bf16.mxu0 %v789_v6 }
  0x4c   :  { %752 = vmatpush3.bf16.msra.mxu1 %v804_v13 }
  0x4d   :  { %722 = vmatpush3.bf16.msra.mxu0 %v789_v6  ;;  %753 = vmatprep.subr.bf16.mxu1 %v805_v16 }
  0x4e   :  { %723 = vmatprep.subr.bf16.mxu0 %v790_v9 }
  0x50   :  { %754 = vmatpush3.bf16.msra.mxu1 %v805_v16 }
  0x51   :  { %724 = vmatpush3.bf16.msra.mxu0 %v790_v9  ;;  %755 = vmatprep.subr.bf16.mxu1 %v806_v17 }
  0x52   :  { %725 = vmatprep.subr.bf16.mxu0 %v791_v11 }
  0x54   :  { %756 = vmatpush3.bf16.msra.mxu1 %v806_v17 }
  0x55   :  { %726 = vmatpush3.bf16.msra.mxu0 %v791_v11  ;;  %757 = vmatprep.subr.bf16.mxu1 %v807_v23 }
  0x58   :  { %728 = vmatmul.mubr.bf16.vlgmr.msra.gmra.mrb[0].mxu0 %v793_v14  ;;  %758 = vmatpush3.bf16.msra.mxu1 %v807_v23 }
  0x59   :  { %731 = vmatprep.mubr.bf16.mxu0 %v794_v15 }
  0x60   :  { %732 = vmatmul.mubr.bf16.gmra.mrb[4].mxu0 %v795_v18 }
  0x61   :  { %735 = vmatprep.mubr.bf16.mxu0 %v796_v19 }
  0x68   :  { %736 = vmatmul.mubr.bf16.gmra.mrb[8].mxu0 %v797_v20 }
  0x69   :  { %739 = vmatprep.mubr.bf16.mxu0 %v798_v21 }
  0x70   :  { %740 = vmatmul.mubr.bf16.gmra.mrb[12].mxu0 %v799_v22 }
 0x12b   :  { %v729_v24 = vpop.f32.mrb[0].mxu0 }
 0x12c   :  { %v222_v25 = vpop.f32.mrb[1].mxu0 }
 0x12d   :  { %v730_v26 = vpop.f32.mrb[2].mxu0 }
 0x12e   :  { %v286_v27 = vpack.c.bf16 %v730_v26, %v729_v24  ;;  %v225_v28 = vpop.f32.mrb[3].mxu0 }
 0x12f   :  { %v285_v29 = vpack.c.bf16 %v225_v28, %v222_v25 }
 0x130   :  { %672 = vst [vmem:[#allocation8 + $0x8] sm:$0xff] %v286_v27  }
 0x131   :  { %636 = vst [vmem:[#allocation8] sm:$0xff] %v285_v29   ;;  %759 = vmatprep.mubr.bf16.mxu1 %v285_v29 }
 0x132   :  { %760 = vmatmul.mubr.bf16.vlgmr.msra.gmra.mrb[0].mxu1 %v286_v27 }
 0x133   :  { %v733_v30 = vpop.f32.mrb[4].mxu0 }
 0x134   :  { %v238_v31 = vpop.f32.mrb[5].mxu0 }
 0x135   :  { %v734_v32 = vpop.f32.mrb[6].mxu0 }
 0x136   :  { %v288_v33 = vpack.c.bf16 %v734_v32, %v733_v30  ;;  %v241_v34 = vpop.f32.mrb[7].mxu0 }
 0x137   :  { %v287_v35 = vpack.c.bf16 %v241_v34, %v238_v31 }
 0x138   :  { %674 = vst [vmem:[#allocation8 + $0x18] sm:$0xff] %v288_v33  }
 0x139   :  { %673 = vst [vmem:[#allocation8 + $0x10] sm:$0xff] %v287_v35   ;;  %763 = vmatprep.mubr.bf16.mxu1 %v287_v35 }
 0x13a   :  { %764 = vmatmul.mubr.bf16.gmra.mrb[4].mxu1 %v288_v33 }
 0x13b   :  { %v737_v36 = vpop.f32.mrb[8].mxu0 }
 0x13c   :  { %v254_v37 = vpop.f32.mrb[9].mxu0 }
 0x13d   :  { %v738_v38 = vpop.f32.mrb[10].mxu0 }
 0x13e   :  { %v290_v39 = vpack.c.bf16 %v738_v38, %v737_v36  ;;  %v257_v40 = vpop.f32.mrb[11].mxu0 }
 0x13f   :  { %v289_v41 = vpack.c.bf16 %v257_v40, %v254_v37 }
 0x140   :  { %676 = vst [vmem:[#allocation8 + $0x28] sm:$0xff] %v290_v39  }
 0x141   :  { %675 = vst [vmem:[#allocation8 + $0x20] sm:$0xff] %v289_v41   ;;  %767 = vmatprep.mubr.bf16.mxu1 %v289_v41 }
 0x142   :  { %768 = vmatmul.mubr.bf16.gmra.mrb[8].mxu1 %v290_v39 }
 0x143   :  { %v741_v42 = vpop.f32.mrb[12].mxu0 }
 0x144   :  { %v270_v43 = vpop.f32.mrb[13].mxu0 }
 0x145   :  { %v742_v44 = vpop.f32.mrb[14].mxu0 }
 0x146   :  { %v292_v45 = vpack.c.bf16 %v742_v44, %v741_v42  ;;  %v273_v46 = vpop.f32.mrb[15].mxu0 }
 0x147   :  { %v291_v47 = vpack.c.bf16 %v273_v46, %v270_v43 }
 0x148   :  { %678 = vst [vmem:[#allocation8 + $0x38] sm:$0xff] %v292_v45  }
 0x149   :  { %677 = vst [vmem:[#allocation8 + $0x30] sm:$0xff] %v291_v47   ;;  %771 = vmatprep.mubr.bf16.mxu1 %v291_v47 }
 0x14a   :  { %772 = vmatmul.mubr.bf16.gmra.mrb[12].mxu1 %v292_v45 }
 0x14b   :  { %885 = shalt.err (!%p882_p0)
}
 0x14c   :  { %s886_s5 = scalar_lea.hbm %s1042_s3, 1024 }
 0x14d   :  { %p887_p1 = scmp.ne.s32.totalorder %s1042_s3, %s886_s5  ;;  %p890_p2 = scmp.lt.u32.totalorder %s886_s5, %s1042_s3 }
 0x14f   :  { %p892_p3 = pnand %p890_p2, %p887_p1 }
 0x151   :  { %895 = shalt.err (!%p892_p3)
}
 0x152   :  { %553 = dma.vmem_to_hbm [thread:$0]  %s548_s25, 1024, %s1042_s3, [#allocation4], %s928_s27, %s928_s27, %s929_s28  }
 0x153   :  { %s932_s3 = smov [#allocation9]  }
 0x154   :  { %s559_s27 = sshll.u32 %s932_s3, 4  ;;  %s560_s27 = int_to_ptr.vmem [resolvable:$true] %s559_s27 }
 0x155   :  { %s896_s28 = scalar_lea.vmem %s560_s27, 2048  ;;  %p901_p5 = scmp.lt.s32.totalorder %s560_s27, %s560_s27 }
 0x156   :  { %p897_p4 = scmp.ne.s32.totalorder %s560_s27, %s896_s28  ;;  %p902_p6 = scmp.lt.s32.totalorder %s896_s28, %s896_s28 }
 0x158   :  { %p903_p7 = por %p902_p6, %p901_p5 }
 0x15a   :  { %p904_p8 = pnand %p903_p7, %p897_p4 }
 0x205   :  { %v761_v48 = vpop.f32.mrb[0].mxu1 }
 0x206   :  { %528 = vst [vmem:[#allocation9 + $0x10] sm:$0xff] %v761_v48  ;;  %v463_v49 = vpop.f32.mrb[1].mxu1 }
 0x207   :  { %526 = vst [vmem:[#allocation9] sm:$0xff] %v463_v49  ;;  %v762_v50 = vpop.f32.mrb[2].mxu1 }
 0x208   :  { %529 = vst [vmem:[#allocation9 + $0x18] sm:$0xff] %v762_v50  ;;  %v466_v51 = vpop.f32.mrb[3].mxu1 }
 0x209   :  { %527 = vst [vmem:[#allocation9 + $0x8] sm:$0xff] %v466_v51 }
 0x20d   :  { %v765_v52 = vpop.f32.mrb[4].mxu1 }
 0x20e   :  { %532 = vst [vmem:[#allocation9 + $0x30] sm:$0xff] %v765_v52  ;;  %v479_v53 = vpop.f32.mrb[5].mxu1 }
 0x20f   :  { %530 = vst [vmem:[#allocation9 + $0x20] sm:$0xff] %v479_v53  ;;  %v766_v54 = vpop.f32.mrb[6].mxu1 }
 0x210   :  { %533 = vst [vmem:[#allocation9 + $0x38] sm:$0xff] %v766_v54  ;;  %v482_v55 = vpop.f32.mrb[7].mxu1 }
 0x211   :  { %531 = vst [vmem:[#allocation9 + $0x28] sm:$0xff] %v482_v55 }
 0x215   :  { %v769_v56 = vpop.f32.mrb[8].mxu1 }
 0x216   :  { %536 = vst [vmem:[#allocation9 + $0x50] sm:$0xff] %v769_v56  ;;  %v495_v57 = vpop.f32.mrb[9].mxu1 }
 0x217   :  { %534 = vst [vmem:[#allocation9 + $0x40] sm:$0xff] %v495_v57  ;;  %v770_v58 = vpop.f32.mrb[10].mxu1 }
 0x218   :  { %537 = vst [vmem:[#allocation9 + $0x58] sm:$0xff] %v770_v58  ;;  %v498_v59 = vpop.f32.mrb[11].mxu1 }
 0x219   :  { %535 = vst [vmem:[#allocation9 + $0x48] sm:$0xff] %v498_v59 }
 0x21d   :  { %v773_v60 = vpop.f32.mrb[12].mxu1 }
 0x21e   :  { %540 = vst [vmem:[#allocation9 + $0x70] sm:$0xff] %v773_v60  ;;  %v511_v61 = vpop.f32.mrb[13].mxu1 }
 0x21f   :  { %538 = vst [vmem:[#allocation9 + $0x60] sm:$0xff] %v511_v61  ;;  %v774_v62 = vpop.f32.mrb[14].mxu1 }
 0x220   :  { %541 = vst [vmem:[#allocation9 + $0x78] sm:$0xff] %v774_v62  ;;  %v514_v63 = vpop.f32.mrb[15].mxu1 }
 0x221   :  { %539 = vst [vmem:[#allocation9 + $0x68] sm:$0xff] %v514_v63 }
 0x222   :  { %907 = shalt.err (!%p904_p8)
}
 0x223   :  { %s908_s13 = scalar_lea.hbm %s1043_s4, 2048 }
 0x224   :  { %p909_p9 = scmp.ne.s32.totalorder %s1043_s4, %s908_s13  ;;  %p912_p10 = scmp.lt.u32.totalorder %s908_s13, %s1043_s4 }
 0x226   :  { %p914_p11 = pnand %p912_p10, %p909_p9 }
 0x228   :  { %917 = shalt.err (!%p914_p11)
}
 0x229   :  { %s933_s19 = smov 128   ;;  %s934_s20 = smov 8  }
 0x22a   :  { %565 = dma.vmem_to_hbm [thread:$0]  %s560_s27, 2048, %s1043_s4, [#allocation10], %s933_s19, %s933_s19, %s934_s20  }
 0x22b   :  { %922 = dma.done.wait [#allocation4], 1024  }
 0x22c   :  { %923 = vsyncadd [#allocation4], 4294966272 }
 0x22d   :  { %924 = dma.done.wait [#allocation10], 2048  }
 0x22e   :  { %925 = vsyncadd [#allocation10], 4294965248 }
 0x22f   :  { %572 = vsyncpa [#allocation3], 1 }
 0x230   :  { %573 = vsyncpa [#allocation6], 1 }
 0x231   :  { %574 = vsyncpa [#allocation4], 1 }
 0x232   :  { %575 = vsyncpa [#allocation10], 1 }

</bundles_post_ra>
